<compile_context>
chip_gen: v7x
topology: tpu7x:2x2x1
jax: 0.10.0
libtpu: 0.0.40
codegen_flags: <defaults>
</compile_context>

<pallas_src>
import jax
import jax.numpy as jnp
from jax.experimental import pallas as pl
from jax.experimental.pallas import tpu as pltpu

LN_EPS = 1e-5                       # nn.LayerNorm default
_INV_SQRT2 = 0.7071067811865476


def dense_block_kernel(x_ref, gamma_ref, beta_ref, w_ref, b_ref, o_ref, g_ref):
    # Grid = (batch_tile i, out_feature_tile j); j is innermost and sequential,
    # so the LN+GELU result for this batch tile is computed once at j == 0,
    # stashed in VMEM scratch (g_ref) and reused for every out_features tile.
    j = pl.program_id(1)

    @pl.when(j == 0)
    def _():
        x = x_ref[...].astype(jnp.float32)                        # (tb, in)
        mean = jnp.mean(x, axis=-1, keepdims=True)
        var = jnp.mean((x - mean) ** 2, axis=-1, keepdims=True)
        xn = (x - mean) * jax.lax.rsqrt(var + LN_EPS)
        y = xn * gamma_ref[...] + beta_ref[...]                    # affine (1,in)
        # exact (erf) GELU — matches torch.nn.functional.gelu default
        g = 0.5 * y * (1.0 + jax.lax.erf(y * jnp.float32(_INV_SQRT2)))
        g_ref[...] = g.astype(g_ref.dtype)                         # W's dtype

    # Linear for this N tile: g @ W[:, j-tile] + b[j-tile]   (MXU, f32 accumulate)
    out = jnp.dot(g_ref[...], w_ref[...], preferred_element_type=jnp.float32)
    out = out + b_ref[...].astype(jnp.float32)
    o_ref[...] = out.astype(o_ref.dtype)


def _pick_tile_b(B, cap=512):
    # Second-to-last block dim must be a multiple of 8 or the full extent.
    if B <= cap:
        return B
    t = (min(cap, B) // 8) * 8
    while t >= 8:
        if B % t == 0:
            return t
        t -= 8
    return B


def _pick_tile_n(N, cap=512):
    # Lane (last) block dim must be a multiple of 128 or the full extent.
    if N % 128 != 0 or N <= cap:
        return N
    t = (min(cap, N) // 128) * 128
    while t >= 128:
        if N % t == 0:
            return t
        t -= 128
    return N


def dense_block(x, gamma, beta, w, b, *, tile_b=None, tile_n=None):
    """x: [B, in_features]; gamma/beta: [in]; w: [in, out]; b: [out]."""
    B, in_f = x.shape
    in_w, out_f = w.shape
    assert in_w == in_f

    if tile_b is None:
        tile_b = _pick_tile_b(B)
    if tile_n is None:
        tile_n = _pick_tile_n(out_f)
    assert B % tile_b == 0 and out_f % tile_n == 0
    assert tile_b == B or tile_b % 8 == 0
    assert tile_n == out_f or tile_n % 128 == 0

    gamma2 = gamma.reshape(1, in_f).astype(jnp.float32)
    beta2 = beta.reshape(1, in_f).astype(jnp.float32)
    b2 = b.reshape(1, out_f)                          # keep native dtype

    grid = (B // tile_b, out_f // tile_n)

    def _isz(a):
        return jnp.dtype(a.dtype).itemsize

    # VMEM budget: double-buffered streams + resident activation scratch.
    vmem_bytes = (
        2 * tile_b * in_f * _isz(x)            # x tile (double-buffered)
        + tile_b * in_f * _isz(w)              # g scratch (resident)
        + 2 * in_f * tile_n * _isz(w)          # W column tile (double-buffered)
        + 2 * tile_b * tile_n * _isz(x)        # out tile (double-buffered)
        + 4 * in_f * 4 + 2 * tile_n * _isz(b)  # gamma/beta/bias
    )
    vmem_limit = int(min(max(vmem_bytes + (8 << 20), 32 << 20), 64 << 20))

    cost = pl.CostEstimate(
        flops=2 * B * in_f * out_f,
        transcendentals=B * in_f,
        bytes_accessed=(x.size * _isz(x) + w.size * _isz(w)
                        + B * out_f * _isz(x)
                        + 2 * in_f * 4 + out_f * _isz(b)),
    )

    return pl.pallas_call(
        dense_block_kernel,
        out_shape=jax.ShapeDtypeStruct((B, out_f), x.dtype),
        grid_spec=pltpu.PrefetchScalarGridSpec(
            num_scalar_prefetch=0,
            grid=grid,
            in_specs=[
                pl.BlockSpec((tile_b, in_f), lambda i, j: (i, 0)),   # x tile
                pl.BlockSpec((1, in_f), lambda i, j: (0, 0)),        # gamma
                pl.BlockSpec((1, in_f), lambda i, j: (0, 0)),        # beta
                pl.BlockSpec((in_f, tile_n), lambda i, j: (0, j)),   # W column tile
                pl.BlockSpec((1, tile_n), lambda i, j: (0, j)),      # bias tile
            ],
            out_specs=pl.BlockSpec((tile_b, tile_n), lambda i, j: (i, j)),
            scratch_shapes=[pltpu.VMEM((tile_b, in_f), w.dtype)],    # LN+GELU result
        ),
        compiler_params=pltpu.CompilerParams(
            dimension_semantics=("parallel", "arbitrary"),
            vmem_limit_bytes=vmem_limit,
        ),
        cost_estimate=cost,
    )(x, gamma2, beta2, w, b2)


def dense_block_ref(x, gamma, beta, w, b):
    """Pure-JAX reference mirroring the PyTorch module."""
    xf = x.astype(jnp.float32)
    mean = jnp.mean(xf, axis=-1, keepdims=True)
    var = jnp.mean((xf - mean) ** 2, axis=-1, keepdims=True)
    xn = (xf - mean) / jnp.sqrt(var + LN_EPS)
    y = xn * gamma + beta
    g = 0.5 * y * (1.0 + jax.lax.erf(y / jnp.sqrt(2.0)))
    return (g @ w.astype(jnp.float32) + b).astype(x.dtype)


if __name__ == "__main__":
    in_features, out_features = 32, 256
    batch = 16

    key = jax.random.PRNGKey(0)
    kx, kw, kb = jax.random.split(key, 3)

    x = jax.random.normal(kx, (batch, in_features), dtype=jnp.float32)

    # Deterministic parameter init mimicking the PyTorch module:
    # layer_norm: weight=ones, bias=zeros (PyTorch defaults)
    gamma = jnp.ones((in_features,), jnp.float32)
    beta = jnp.zeros((in_features,), jnp.float32)
    # fc1: uniform(-1/sqrt(in), 1/sqrt(in)) like nn.Linear; stored as [in, out]
    bound = 1.0 / jnp.sqrt(jnp.float32(in_features))
    w = jax.random.uniform(kw, (in_features, out_features), jnp.float32, -bound, bound)
    b = jax.random.uniform(kb, (out_features,), jnp.float32, -bound, bound)

    # Explicit small tiles so the demo exercises both grid axes
    # (2 batch tiles x 2 out_features tiles) and the scratch-reuse path.
    out = dense_block(x, gamma, beta, w, b, tile_b=8, tile_n=128)
    out = jax.block_until_ready(out)

    ref = dense_block_ref(x, gamma, beta, w, b)
    assert out.shape == (batch, out_features)
    assert jnp.allclose(out, ref, atol=2e-5, rtol=2e-5), "mismatch vs reference"

    print("KERNEL_OK")
</pallas_src>

<mosaic_0001>
module attributes {stable_mosaic.version = 11 : i64} {
  func.func @dense_block_kernel(%arg0: i32, %arg1: i32, %arg2: memref<8x32xf32, #tpu.memory_space<vmem>>, %arg3: memref<1x32xf32, #tpu.memory_space<vmem>>, %arg4: memref<1x32xf32, #tpu.memory_space<vmem>>, %arg5: memref<32x128xf32, #tpu.memory_space<vmem>>, %arg6: memref<1x128xf32, #tpu.memory_space<vmem>>, %arg7: memref<8x128xf32, #tpu.memory_space<vmem>>, %arg8: memref<8x32xf32, #tpu.memory_space<vmem>>) attributes {dimension_semantics = [#tpu.dimension_semantics<parallel>, #tpu.dimension_semantics<arbitrary>], iteration_bounds = array<i64: 2, 2>, scalar_prefetch = 0 : i64, scratch_operands = 1 : i64, tpu.core_type = #tpu.core_type<tc>, window_params = [{transform_indices = @transform_0, window_bounds = array<i64: 8, 32>}, {pipeline_mode = #tpu.pipeline_mode<synchronous>, transform_indices = @transform_1, window_bounds = array<i64: 1, 32>}, {pipeline_mode = #tpu.pipeline_mode<synchronous>, transform_indices = @transform_2, window_bounds = array<i64: 1, 32>}, {transform_indices = @transform_3, window_bounds = array<i64: 32, 128>}, {transform_indices = @transform_4, window_bounds = array<i64: 1, 128>}, {transform_indices = @transform_5, window_bounds = array<i64: 8, 128>}]} {
    %c0_i32 = arith.constant 0 : i32
    %0 = arith.cmpi eq, %arg1, %c0_i32 : i32
    %1 = arith.extui %0 : i1 to i32
    %c0_i32_0 = arith.constant 0 : i32
    %2 = arith.cmpi ne, %1, %c0_i32_0 : i32
    scf.if %2 {
      %c0_8 = arith.constant 0 : index
      %c0_9 = arith.constant 0 : index
      %10 = vector.load %arg2[%c0_8, %c0_9] : memref<8x32xf32, #tpu.memory_space<vmem>>, vector<8x32xf32>
      %cst_10 = arith.constant dense<0.000000e+00> : vector<8xf32>
      %11 = vector.multi_reduction <add>, %10, %cst_10 [1] : vector<8x32xf32> to vector<8xf32>
      %12 = vector.shape_cast %11 : vector<8xf32> to vector<8x1xf32>
      %cst_11 = arith.constant 3.200000e+01 : f32
      %13 = vector.broadcast %cst_11 : f32 to vector<8x1xf32>
      %14 = arith.divf %12, %13 : vector<8x1xf32>
      %15 = vector.broadcast %14 : vector<8x1xf32> to vector<8x32xf32>
      %16 = arith.subf %10, %15 : vector<8x32xf32>
      %17 = arith.mulf %16, %16 : vector<8x32xf32>
      %cst_12 = arith.constant dense<0.000000e+00> : vector<8xf32>
      %18 = vector.multi_reduction <add>, %17, %cst_12 [1] : vector<8x32xf32> to vector<8xf32>
      %19 = vector.shape_cast %18 : vector<8xf32> to vector<8x1xf32>
      %cst_13 = arith.constant 3.200000e+01 : f32
      %20 = vector.broadcast %cst_13 : f32 to vector<8x1xf32>
      %21 = arith.divf %19, %20 : vector<8x1xf32>
      %22 = vector.broadcast %14 : vector<8x1xf32> to vector<8x32xf32>
      %23 = arith.subf %10, %22 : vector<8x32xf32>
      %cst_14 = arith.constant 9.99999974E-6 : f32
      %24 = vector.broadcast %cst_14 : f32 to vector<8x1xf32>
      %25 = arith.addf %21, %24 : vector<8x1xf32>
      %26 = math.rsqrt %25 : vector<8x1xf32>
      %27 = vector.broadcast %26 : vector<8x1xf32> to vector<8x32xf32>
      %28 = arith.mulf %23, %27 : vector<8x32xf32>
      %c0_15 = arith.constant 0 : index
      %c0_16 = arith.constant 0 : index
      %29 = vector.load %arg3[%c0_15, %c0_16] : memref<1x32xf32, #tpu.memory_space<vmem>>, vector<1x32xf32>
      %30 = vector.broadcast %29 : vector<1x32xf32> to vector<8x32xf32>
      %31 = arith.mulf %28, %30 : vector<8x32xf32>
      %c0_17 = arith.constant 0 : index
      %c0_18 = arith.constant 0 : index
      %32 = vector.load %arg4[%c0_17, %c0_18] : memref<1x32xf32, #tpu.memory_space<vmem>>, vector<1x32xf32>
      %33 = vector.broadcast %32 : vector<1x32xf32> to vector<8x32xf32>
      %34 = arith.addf %31, %33 : vector<8x32xf32>
      %cst_19 = arith.constant 5.000000e-01 : f32
      %35 = vector.broadcast %cst_19 : f32 to vector<8x32xf32>
      %36 = arith.mulf %35, %34 : vector<8x32xf32>
      %cst_20 = arith.constant 0.707106769 : f32
      %37 = vector.broadcast %cst_20 : f32 to vector<8x32xf32>
      %38 = arith.mulf %34, %37 : vector<8x32xf32>
      %39 = math.erf %38 : vector<8x32xf32>
      %cst_21 = arith.constant 1.000000e+00 : f32
      %40 = vector.broadcast %cst_21 : f32 to vector<8x32xf32>
      %41 = arith.addf %40, %39 : vector<8x32xf32>
      %42 = arith.mulf %36, %41 : vector<8x32xf32>
      %c0_22 = arith.constant 0 : index
      %c0_23 = arith.constant 0 : index
      %43 = vector.load %arg8[%c0_22, %c0_23] : memref<8x32xf32, #tpu.memory_space<vmem>>, vector<8x32xf32>
      tpu.vector_store %arg8[%c0_22, %c0_23], %42 {strides = array<i32>} : memref<8x32xf32, #tpu.memory_space<vmem>>, vector<8x32xf32>,
    } else {
    }
    %c0 = arith.constant 0 : index
    %c0_1 = arith.constant 0 : index
    %3 = vector.load %arg8[%c0, %c0_1] : memref<8x32xf32, #tpu.memory_space<vmem>>, vector<8x32xf32>
    %c0_2 = arith.constant 0 : index
    %c0_3 = arith.constant 0 : index
    %4 = vector.load %arg5[%c0_2, %c0_3] : memref<32x128xf32, #tpu.memory_space<vmem>>, vector<32x128xf32>
    %cst = arith.constant dense<0.000000e+00> : vector<8x128xf32>
    %5 = tpu.matmul %3, %4, %cst {dimension_numbers = #tpu.dot_dimension_numbers<[1], [0], [0], [1], [0, 0, 1, 1], [], []>} : vector<8x32xf32>, vector<32x128xf32>, vector<8x128xf32> -> vector<8x128xf32>
    %c0_4 = arith.constant 0 : index
    %c0_5 = arith.constant 0 : index
    %6 = vector.load %arg6[%c0_4, %c0_5] : memref<1x128xf32, #tpu.memory_space<vmem>>, vector<1x128xf32>
    %7 = vector.broadcast %6 : vector<1x128xf32> to vector<8x128xf32>
    %8 = arith.addf %5, %7 : vector<8x128xf32>
    %c0_6 = arith.constant 0 : index
    %c0_7 = arith.constant 0 : index
    %9 = vector.load %arg7[%c0_6, %c0_7] : memref<8x128xf32, #tpu.memory_space<vmem>>, vector<8x128xf32>
    tpu.vector_store %arg7[%c0_6, %c0_7], %8 {strides = array<i32>} : memref<8x128xf32, #tpu.memory_space<vmem>>, vector<8x128xf32>,
    return
  }
  func.func @transform_0(%arg0: i32, %arg1: i32) -> (i32, i32) {
    %c0_i32 = arith.constant 0 : i32
    %c0_i32_0 = arith.constant 0 : i32
    return %arg0, %c0_i32 : i32, i32
  }
  func.func @transform_1(%arg0: i32, %arg1: i32) -> (i32, i32) {
    %c0_i32 = arith.constant 0 : i32
    %c0_i32_0 = arith.constant 0 : i32
    %c0_i32_1 = arith.constant 0 : i32
    return %c0_i32, %c0_i32_0 : i32, i32
  }
  func.func @transform_2(%arg0: i32, %arg1: i32) -> (i32, i32) {
    %c0_i32 = arith.constant 0 : i32
    %c0_i32_0 = arith.constant 0 : i32
    %c0_i32_1 = arith.constant 0 : i32
    return %c0_i32, %c0_i32_0 : i32, i32
  }
  func.func @transform_3(%arg0: i32, %arg1: i32) -> (i32, i32) {
    %c0_i32 = arith.constant 0 : i32
    %c0_i32_0 = arith.constant 0 : i32
    return %c0_i32, %arg1 : i32, i32
  }
  func.func @transform_4(%arg0: i32, %arg1: i32) -> (i32, i32) {
    %c0_i32 = arith.constant 0 : i32
    %c0_i32_0 = arith.constant 0 : i32
    return %c0_i32, %arg1 : i32, i32
  }
  func.func @transform_5(%arg0: i32, %arg1: i32) -> (i32, i32) {
    %c0_i32 = arith.constant 0 : i32
    return %arg0, %arg1 : i32, i32
  }
}

</mosaic_0001>

<bundles_post_ra>
// kernel: tpu_custom_call.1
= control target key start
LH: loop header
LB: loop body
LE: loop exit
PB: predicated region body
PF: predicated region fallthrough
CT: control target
= control target key end

     0   :  { %s1379_s0 = inlined_call_operand.hbm [shape: f32[16,32], index: 0, kind: input, shape index: {}]   ;;  %s1380_s1 = inlined_call_operand.vmem [shape: f32[1,32], index: 1, kind: input, shape index: {}]   ;;  %s1381_s2 = inlined_call_operand.vmem [shape: f32[1,32], index: 2, kind: input, shape index: {}]   ;;  %s1382_s3 = inlined_call_operand.hbm [shape: f32[32,256], index: 3, kind: input, shape index: {}]   ;;  %s1383_s4 = inlined_call_operand.vmem [shape: f32[1,256], index: 4, kind: input, shape index: {}]   ;;  %s1384_s5 = inlined_call_operand.hbm [shape: f32[16,256], index: 5, kind: output, shape index: {}]  }
   0x1   :  { %1395 = sst [smem:[#allocation20_spill]] %s1379_s0 }
   0x2   :  { %1396 = sst [smem:[#allocation21_spill]] %s1384_s5 }
   0x3   :  { %10 = vsyncpa [#allocation4], 0 }
   0x4   :  { %12 = vsyncpa [#allocation4 + $0x1], 0 }
   0x5   :  { %13 = vsyncpa [#allocation7], 0 }
   0x6   :  { %15 = vsyncpa [#allocation7 + $0x1], 0 }
   0x7   :  { %16 = vsyncpa [#allocation5], 0 }
   0x8   :  { %18 = vsyncpa [#allocation5 + $0x1], 0  ;;  %s1003_s18 = smov 0   ;;  %s1005_s19 = smov 0  }
   0x9   :  { %s1007_s20 = smov 0   ;;  %s1009_s21 = smov 0  }
   0xa   :  { %s1011_s22 = smov 0   ;;  %s1013_s23 = smov 0  }
   0xb   :  { %s1015_s24 = smov 0   ;;  %s1017_s25 = smov 0  }
   0xc   :  { %s1019_s26 = smov 0   ;;  %s1021_s27 = smov 0  }
   0xd   :  { %s1023_s28 = smov 0   ;;  %s1025_s29 = smov 0  }
   0xe   :  { %s1027_s30 = smov 0   ;;  %s1029_s6 = smov 0  }
   0xf LB: > { %1397 = sst [smem:[#allocation12_spill]] %s910_s18  ;;  %s1385_s7 = sadd.s32 4294967295, %s962_s6   ;;  %s962_s6 = sphi %s1029_s6, %s24_s6   ;;  %s958_s30 = sphi %s1027_s30, %s1433_s30   ;;  %s954_s29 = sphi %s1025_s29, %s1432_s29   ;;  %s950_s28 = sphi %s1023_s28, %s1431_s28   ;;  %s946_s27 = sphi %s1021_s27, %s1430_s27   ;;  %s942_s26 = sphi %s1019_s26, %s1442_s26   ;;  %s938_s25 = sphi %s1017_s25, %s1441_s25   ;;  %s934_s24 = sphi %s1015_s24, %s1440_s24   ;;  %s930_s23 = sphi %s1013_s23, %s1439_s23   ;;  %s926_s22 = sphi %s1011_s22, %s1438_s22   ;;  %s922_s21 = sphi %s1009_s21, %s1437_s21   ;;  %s918_s20 = sphi %s1007_s20, %s1436_s20   ;;  %s914_s19 = sphi %s1005_s19, %s1435_s19   ;;  %s910_s18 = sphi %s1003_s18, %s1434_s18  }
  0x10   : > { %1398 = sst [smem:[#allocation13_spill]] %s954_s29  ;;  %s33_s9 = sadd.s32 1, %s954_s29 }
  0x11   : > { %1399 = sst [smem:[#allocation14_spill]] %s958_s30  ;;  %s36_s10 = sadd.s32 1, %s958_s30 }
  0x12   : > { %p34_p0 = scmp.ge.s32.totalorder %s33_s9, 2  ;;  %s43_s11 = sadd.s32 1, %s942_s26 }
  0x13   : > { %p50_p1 = scmp.ne.s32.totalorder %s942_s26, %s938_s25  ;;  %p51_p2 = scmp.eq.s32.totalorder %s962_s6, 0 }
  0x14   : > { %s1444_s9 = smov (%p34_p0, %s33_s9), 0  ;;  %s1446_s10 = smov (!%p34_p0, %s36_s10), %s958_s30 }
  0x15   : > { %1400 = sst [smem:[#allocation15_spill]] %s1444_s9  ;;  %p1084_p3 = por %p51_p2, %p50_p1 }
  0x16   : > { %p56_p4 = scmp.ne.s32.totalorder %s938_s25, %s934_s24  ;;  %p38_p5 = scmp.ge.s32.totalorder %s1446_s10, 2 }
  0x17   : > { %p1091_p6 = scmp.eq.s32.totalorder %s1385_s7, 0  ;;  %s108_s14 = ssub.s32 %s954_s29, %s1444_s9 }
  0x18   : > { %s111_s15 = sadd.s32 1, %s930_s23  ;;  %s1448_s10 = smov (%p38_p5, %s1446_s10), 0 }
  0x19   : > { %1403 = sst [smem:[#allocation16_spill]] %s1448_s10  ;;  %p1102_p7 = por %p1091_p6, %p56_p4 }
  0x1a   : > { %p109_p8 = scmp.eq.s32.totalorder %s108_s14, 0  ;;  %s40_s17 = ssub.s32 %s958_s30, %s1448_s10 }
  0x1b   : > { %s1404_s16 = scalar_select %p1102_p7, 1, 0 }
  0x1c   : > { %p118_p9 = scmp.ne.s32.totalorder %s930_s23, %s926_s22  ;;  %p41_p10 = scmp.eq.s32.totalorder %s40_s17, 0 }
  0x1d   : > { %p124_p11 = scmp.ne.s32.totalorder %s926_s22, %s922_s21  ;;  %s162_s10 = sor.u32 %s108_s14, %s40_s17 }
  0x1e   : > { %s1113_s24 = scalar_select %p109_p8, %s930_s23, %s111_s15  }
  0x1f   : > { %s1116_s8 = scalar_select %p41_p10, %s942_s26, %s43_s11  }
  0x20   : > { %1405 = sst [smem:[#allocation17_spill]] %s1113_s24  ;;  %p1120_p12 = por %p118_p9, %p51_p2 }
  0x21   : > { %1406 = sst [smem:[#allocation18_spill]] %s1116_s8  ;;  %p1126_p13 = por %p124_p11, %p1091_p6 }
  0x22   : > { %s165_s5 = sadd.s32 1, %s918_s20  ;;  %p163_p0 = scmp.eq.s32.totalorder %s162_s10, 0 }
  0x23   : > { %s1408_s9 = scalar_select %p1126_p13, 1, 0 }
  0x24   : > { %p175_p1 = scmp.ne.s32.totalorder %s918_s20, %s914_s19  ;;  %s1409_s21 = sadd.s32 4294967295, %s962_s6  }
  0x25   : > { %p176_p4 = scmp.eq.s32.totalorder %s1409_s21, 3  ;;  %p181_p5 = scmp.ne.s32.totalorder %s914_s19, %s910_s18 }
  0x26   : > { %s1138_s11 = scalar_select %p163_p0, %s918_s20, %s165_s5  }
  0x27   : > { %p1140_p2 = por %p176_p4, %p175_p1  ;;  %s1412_s13 = sadd.s32 4294967294, %s962_s6  }
  0x28   : > { %1410 = sst [smem:[#allocation19_spill]] %s1138_s11  ;;  %p182_p6 = scmp.eq.s32.totalorder %s1412_s13, 3 }
  0x29   : > { %s1411_s15 = scalar_select %p1140_p2, 1, 0 }
  0x2a   : > { %p628_p8 = scmp.lt.s32.totalorder %s962_s6, 4  ;;  %p1147_p9 = por %p182_p6, %p181_p5 }
  0x2b   : > { %s208_s10 = sand.u32 1, %s942_s26   ;;  %s572_s8 = sshll.u32 %s958_s30, 7 }
  0x2c   : > { %s1413_s14 = scalar_select %p1147_p9, 1, 0 }
  0x2d   : > { %s571_s17 = sshll.u32 %s208_s10, 3  ;;  %s1414_s0 = sld [smem:[#allocation20_spill]] }
  0x2e   : > { %s212_s5 = scalar_lea.vmem [#allocation3], %s571_s17  ;;  %p1162_p10 = pnand %p628_p8, %p1084_p3 }
  0x2f   : > { %s219_s11 = sshll.u32 %s212_s5, 4  ;;  %p1168_p11 = pnand %p628_p8, %p1120_p12  ;;  %s1158_s11 = int_to_ptr.vmem [resolvable:$true] %s219_s11 }
  0x30   : > { %p754_p5 = pneg %p1162_p10 }
  0x33   : > { %s1156_s18 = scalar_lea.hbm %s1414_s0, %s572_s8  ;;  %s209_s8 = scalar_lea.sflag [#allocation4], %s208_s10 }
  0x34   : > { %s752_s17 = scalar_lea.hbm %s1156_s18, 128  ;;  %s757_s7 = scalar_lea.hbm %s1414_s0, 256 }
  0x35   : > { %p753_p4 = scmp.ne.s32.totalorder %s1156_s18, %s752_s17  ;;  %p758_p12 = scmp.lt.u32.totalorder %s1156_s18, %s1414_s0 }
  0x36   : > { %p759_p8 = scmp.lt.u32.totalorder %s757_s7, %s752_s17  ;;  %p761_p1 = scmp.lt.u32.totalorder %s752_s17, %s1156_s18 }
  0x37   : > { %p755_p3 = pnand %p754_p5, %p753_p4 }
  0x38   : > { %p760_p0 = por %p759_p8, %p758_p12 }
  0x39   : > { %p756_p6 = pneg %p755_p3 }
  0x3a   : > { %p762_p9 = por %p761_p1, %p760_p0 }
  0x3c   : > { %p763_p2 = pnand %p762_p9, %p756_p6 }
  0x3e   : > { %766 = shalt.err (!%p763_p2)
}
  0x3f   : > { %s767_s10 = scalar_lea.vmem %s1158_s11, 128  ;;  %s964_s12 = smov [#allocation3]  }
  0x40   : > { %p768_p4 = scmp.ne.s32.totalorder %s1158_s11, %s767_s10  ;;  %s772_s21 = sshll.u32 %s964_s12, 4  ;;  %s773_s21 = int_to_ptr.vmem [resolvable:$false] %s772_s21 }
  0x41   : > { %s774_s30 = scalar_lea.vmem %s773_s21, 256  ;;  %p775_p7 = scmp.lt.s32.totalorder %s1158_s11, %s773_s21 }
  0x42   : > { %p770_p3 = pnand %p768_p4, %p754_p5  ;;  %p776_p12 = scmp.lt.s32.totalorder %s774_s30, %s767_s10 }
  0x44   : > { %p771_p13 = pneg %p770_p3  ;;  %p777_p8 = por %p776_p12, %p775_p7 }
  0x46   : > { %p778_p0 = pnand %p777_p8, %p771_p13 }
  0x48   : > { %781 = shalt.err (!%p778_p0)
}
  0x49   : > { %620 = dma.hbm_to_vmem [thread:$0]  (!%p1162_p10), %s1156_s18, 128, %s1158_s11, %s209_s8  }
  0x4a   : > { %p1417_p2 = scmp.lt.s32.totalorder %s962_s6, 5  ;;  %p1418_p9 = scmp.ge.s32.totalorder %s962_s6, 1 }
  0x4b   : > { %s226_s7 = sand.u32 1, %s930_s23   ;;  %s574_s5 = sshll.u32 %s954_s29, 7 }
  0x4c   : > { %p1203_p1 = pnand %p1418_p9, %p1417_p2  ;;  %s573_s10 = sshll.u32 %s226_s7, 5 }
  0x4d   : > { %s1212_s21 = scalar_lea.hbm %s1382_s3, %s574_s5  ;;  %s230_s30 = scalar_lea.vmem [#allocation6], %s573_s10 }
  0x4e   : > { %s236_s18 = sshll.u32 %s230_s30, 4  ;;  %s1216_s11 = scalar_lea.sflag [#allocation7], %s226_s7  ;;  %s1214_s18 = int_to_ptr.vmem [resolvable:$true] %s236_s18 }
  0x4f   : > { %s782_s8 = scalar_lea.hbm %s1212_s21, 512  ;;  %p784_p13 = pneg %p1168_p11 }
  0x50   : > { %p783_p7 = scmp.ne.s32.totalorder %s1212_s21, %s782_s8  ;;  %s787_s13 = scalar_lea.hbm %s1382_s3, 1024 }
  0x51   : > { %p788_p6 = scmp.lt.u32.totalorder %s1212_s21, %s1382_s3  ;;  %p789_p4 = scmp.lt.u32.totalorder %s787_s13, %s782_s8 }
  0x52   : > { %p785_p10 = pnand %p784_p13, %p783_p7  ;;  %p791_p12 = scmp.lt.u32.totalorder %s782_s8, %s1212_s21 }
  0x53   : > { %p790_p3 = por %p789_p4, %p788_p6 }
  0x54   : > { %p786_p5 = pneg %p785_p10 }
  0x55   : > { %p792_p8 = por %p791_p12, %p790_p3 }
  0x57   : > { %p793_p0 = pnand %p792_p8, %p786_p5 }
  0x59   : > { %796 = shalt.err (!%p793_p0)
}
  0x5a   : > { %s797_s7 = scalar_lea.vmem %s1214_s18, 512  ;;  %s965_s10 = smov [#allocation6]  }
  0x5b   : > { %p798_p2 = scmp.ne.s32.totalorder %s1214_s18, %s797_s7  ;;  %s802_s30 = sshll.u32 %s965_s10, 4  ;;  %s803_s30 = int_to_ptr.vmem [resolvable:$false] %s802_s30 }
  0x5c   : > { %s804_s0 = scalar_lea.vmem %s803_s30, 1024  ;;  %p805_p10 = scmp.lt.s32.totalorder %s1214_s18, %s803_s30 }
  0x5d   : > { %p800_p9 = pnand %p798_p2, %p784_p13  ;;  %p806_p6 = scmp.lt.s32.totalorder %s804_s0, %s797_s7 }
  0x5f   : > { %p801_p7 = pneg %p800_p9  ;;  %p807_p4 = por %p806_p6, %p805_p10 }
  0x61   : > { %p808_p3 = pnand %p807_p4, %p801_p7 }
  0x63   : > { %811 = shalt.err (!%p808_p3)
}
  0x64   : > { %s966_s29 = smov 256   ;;  %s967_s8 = smov 128  }
  0x65   : > { %s968_s5 = smov 8   ;;  %254 = sbr.rel (%p1203_p1) target bundleno = 686 (0x2ae), region = 40 }
  0x66   : > { %623 = dma.hbm_to_vmem [thread:$0]  (!%p1168_p11), %s1212_s21, 512, %s1214_s18, %s1216_s11, %s966_s29, %s967_s8, %s968_s5  }
  0x67   : > { %s256_s12 = sand.u32 (!%p1203_p1), 1, %s938_s25   ;;  %p1420_p13 = scmp.ne.s32.totalorder (!%p1203_p1), %s1404_s16, 0 }
  0x68   : > { %s576_s13 = sshll.u32 (!%p1203_p1), %s256_s12, 3  ;;  %s257_s7 = scalar_lea.sflag (!%p1203_p1), [#allocation4], %s256_s12 }
  0x69   : > { %s260_s10 = scalar_lea.vmem (!%p1203_p1), [#allocation3], %s576_s13 }
  0x6c   : > { %897 = dma.done.wait (%p1420_p13), %s257_s7, 128  }
  0x6d   : > { %899 = vsyncadd (%p1420_p13), %s257_s7, 4294967168  ;;  %s265_s30 = sand.u32 1, %s926_s22   ;;  %p1421_p11 = scmp.ne.s32.totalorder %s1408_s9, 0 }
  0x6e   : > { %s577_s0 = sshll.u32 %s265_s30, 5  ;;  %s266_s24 = scalar_lea.sflag [#allocation7], %s265_s30 }
  0x6f   : > { %s1252_s21 = scalar_lea.vmem [#allocation6], %s577_s0 }
  0x70   : > { %901 = dma.done.wait (%p1421_p11), %s266_s24, 512  }
  0x71   : > { %903 = vsyncadd (%p1421_p11), %s266_s24, 4294966784  ;;  %s301_s17 = sand.u32 1, %s914_s19   ;;  %p304_p1 = scmp.lt.s32.totalorder %s946_s27, 1 }
  0x72   : > { %s1262_s16 = sshll.u32 %s301_s17, 3  ;;  %p579_p5 = scmp.ne.s32.totalorder %s946_s27, 0 }
  0x73   : > { %s1265_s18 = scalar_select %p304_p1, %s946_s27, 1 }
  0x74   : > { %s303_s5 = scalar_lea.vmem [#allocation8], %s1262_s16  ;;  %310 = sbr.rel (%p579_p5) target bundleno = 448 (0x1c0), region = 52  ;;  %v311_v0 = vld [vmem:[%s260_s10] sm:$0xff] (!%p579_p5)  ;;  %vm312_vm0 = vcmask (!%p579_p5), 261120   ;;  %v580_v11 = vld [vmem:[%s1380_s1] ss:$0 sm:$0xff] (!%p579_p5) }
  0x75   : > { %s306_s8 = scalar_lea.vmem %s1383_s4, %s1265_s18  ;;  %v313_v1 = vsel (!%p579_p5), %vm312_vm0, %v311_v0, 0.0  ;;  %v581_v13 = vld [vmem:[%s1381_s2] ss:$0 sm:$0xff] (!%p579_p5) }
  0x76   : > { %314 = vadd.xlane.f32.xlu0 (!%p579_p5), %v313_v1 }
 0x103   : > { %v315_v2 = vpop.xlane.xlu0 %314 }
 0x104   : > { %v317_v3 = vmul.f32 0.03125, %v315_v2 }
 0x106   : > { %v318_v4 = vsub.f32 %v311_v0, %v317_v3 }
 0x108   : > { %v319_v5 = vmul.f32 %v318_v4, %v318_v4 }
 0x10a   : > { %v320_v6 = vsel %vm312_vm0, %v319_v5, 0.0 }
 0x10b   : > { %321 = vadd.xlane.f32.xlu0 %v320_v6 }
 0x198   : > { %v322_v7 = vpop.xlane.xlu0 %321 }
 0x199   : > { %v323_v8 = vmul.f32 0.03125, %v322_v7 }
 0x19b   : > { %v324_v9 = vadd.f32 1e-05, %v323_v8 }
 0x19d   : > { %748 = vrsqrt.f32 %v324_v9 }
 0x1a7   : > { %v749_v10 = vpop.eup %748 }
 0x1a8   : > { %v326_v12 = vmul.f32 %v749_v10, %v318_v4 }
 0x1aa   : > { %v334_v14 = vmul.f32 %v580_v11, %v326_v12 }
 0x1ac   : > { %v342_v15 = vadd.f32 %v581_v13, %v334_v14 }
 0x1ae   : > { %v344_v16 = vmul.f32 0.70710677, %v342_v15  ;;  %v343_v18 = vmul.f32 0.5, %v342_v15 }
 0x1b0   : > { %750 = verf.f32 %v344_v16 }
 0x1ba   : > { %v751_v17 = vpop.eup %750 }
 0x1bb   : > { %v346_v19 = vadd.f32 1.0, %v751_v17 }
 0x1bd   : > { %v347_v20 = vmul.f32 %v346_v19, %v343_v18 }
 0x1bf   : > { %348 = vst.msk [vmem:[#allocation2] sm:$0xff] %vm312_vm0, %v347_v20 }
 0x1c0 PF: > { %v350_v21 = vld [vmem:[%s1252_s21] sm:$0xff]  ;;  %v351_v22 = vld [vmem:[%s1252_s21 + $0x8] sm:$0xff]  ;;  %v352_v23 = vld [vmem:[%s1252_s21 + $0x10] sm:$0xff]  ;;  %v969_v24 = vmov 0.0|0.0   ;;  %vm970_vm1 = vmmov 0   ;;  %v971_v27 = vmov 0.0  }
 0x1c1   : > { %605 = vmatprep.subr.bf16.mxu0 %v969_v24  ;;  %v606_v25 = vpack.c.bf16 %v351_v22, %v350_v21  ;;  %v353_v26 = vld [vmem:[%s1252_s21 + $0x18] sm:$0xff]  ;;  %602 = vmatprep.mubr.msk.f32.mxu0 %vm970_vm1, %v971_v27  ;;  %vm361_vm2 = vcmask 261120   ;;  %s585_s10 = sshll.u32 %s950_s28, 1  ;;  %v582_v30 = vld [vmem:[%s306_s8] ss:$0 sm:$0xff]  ;;  %s452_s11 = sshll.u32 %s303_s5, 4  ;;  %s1300_s11 = int_to_ptr.vmem [resolvable:$true] %s452_s11 }
 0x1c2   : > { %v609_v28 = vpack.c.bf16 %v353_v26, %v352_v23  ;;  %s448_s30 = sadd.s32 %s946_s27, %s585_s10  ;;  %s1422_s12 = sld [smem:[#allocation21_spill]] }
 0x1c3   : > { %607 = vmatpush3.bf16.msra.mxu0 %v606_v25  ;;  %s586_s21 = sshll.u32 %s448_s30, 7  ;;  %s437_s27 = scalar_lea.sflag [#allocation5], %s301_s17 }
 0x1c4   : > { %608 = vmatprep.subr.bf16.mxu0 %v969_v24  ;;  %s812_s28 = scalar_lea.vmem %s1300_s11, 128  ;;  %p1423_p8 = scmp.ne.s32.totalorder %s1411_s15, 0 }
 0x1c5   : > { %p813_p12 = scmp.ne.s32.totalorder %s1300_s11, %s812_s28  ;;  %s972_s18 = smov [#allocation8]  }
 0x1c6   : > { %v349_v29 = vld [vmem:[#allocation2] sm:$0xff]  ;;  %s816_s8 = sshll.u32 %s972_s18, 4  ;;  %s817_s8 = int_to_ptr.vmem [resolvable:$false] %s816_s8 }
 0x1c7   : > { %610 = vmatpush3.bf16.msra.mxu0 %v609_v28  ;;  %p814_p0 = pnand %p813_p12, %p1423_p8  ;;  %s818_s7 = scalar_lea.vmem %s817_s8, 256 }
 0x1c8   : > { %s1298_s13 = scalar_lea.hbm %s1422_s12, %s586_s21  ;;  %p819_p9 = scmp.lt.s32.totalorder %s1300_s11, %s817_s8 }
 0x1c9   : > { %p815_p2 = pneg %p814_p0  ;;  %p820_p7 = scmp.lt.s32.totalorder %s818_s7, %s812_s28 }
 0x1ca   : > { %603 = vmatmul.mubr.msk.f32.vlgmr.msra.gmra.mrb[0].mxu0 %vm361_vm2, %v349_v29 }
 0x1cb   : > { %p821_p10 = por %p820_p7, %p819_p9 }
 0x1cd   : > { %p822_p6 = pnand %p821_p10, %p815_p2 }
 0x29d   : > { %v431_v31 = vpop.f32.mrb[0].mxu0 }
 0x29e   : > { %v432_v32 = vadd.f32 %v582_v30, %v431_v31  ;;  %v604_v33 = vpop.f32.mrb[1].mxu0 }
 0x2a0   : > { %435 = vst [vmem:[%s303_s5] sm:$0xff] %v432_v32 }
 0x2a1   : > { %825 = shalt.err (!%p822_p6)
}
 0x2a2   : > { %s826_s17 = scalar_lea.hbm %s1298_s13, 128  ;;  %s830_s10 = scalar_lea.hbm %s1422_s12, 512 }
 0x2a3   : > { %p827_p4 = scmp.ne.s32.totalorder %s1298_s13, %s826_s17  ;;  %p831_p11 = scmp.lt.u32.totalorder %s1298_s13, %s1422_s12 }
 0x2a4   : > { %p832_p1 = scmp.lt.u32.totalorder %s830_s10, %s826_s17  ;;  %p834_p12 = scmp.lt.u32.totalorder %s826_s17, %s1298_s13 }
 0x2a5   : > { %p828_p3 = pnand %p827_p4, %p1423_p8 }
 0x2a6   : > { %p833_p5 = por %p832_p1, %p831_p11 }
 0x2a7   : > { %p829_p13 = pneg %p828_p3 }
 0x2a8   : > { %p835_p0 = por %p834_p12, %p833_p5 }
 0x2aa   : > { %p836_p2 = pnand %p835_p0, %p829_p13 }
 0x2ac   : > { %839 = shalt.err (!%p836_p2)
}
 0x2ad   : > { %615 = dma.vmem_to_hbm [thread:$0]  (%p1423_p8), %s1300_s11, 128, %s1298_s13, %s437_s27  }
 0x2ae PF: > { %s1424_s24 = sld [smem:[#allocation12_spill]]  ;;  %p629_p9 = scmp.ge.s32.totalorder %s962_s6, 2 }
 0x2af   : > { %p1425_p7 = scmp.ne.s32.totalorder %s1413_s14, 0 }
 0x2b1   : > { %p625_p10 = pnand %p629_p9, %p1425_p7 }
 0x2b4   : > { %s464_s21 = sand.u32 1, %s1424_s24  }
 0x2b5   : > { %s465_s29 = scalar_lea.sflag [#allocation5], %s464_s21 }
 0x2b6   : > { %905 = dma.done.wait (!%p625_p10), %s465_s29, 128  }
 0x2b7   : > { %907 = vsyncadd (!%p625_p10), %s465_s29, 4294967168  ;;  %s24_s6 = sadd.s32 1, %s962_s6   ;;  %s1427_s15 = sld [smem:[#allocation19_spill]] }
 0x2b8   : > { %p1332_p6 = scmp.ge.s32.totalorder %s24_s6, 6   ;;  %s1428_s11 = sld [smem:[#allocation17_spill]] }
 0x2b9   : > { %s1429_s13 = sld [smem:[#allocation18_spill]]  ;;  %s1430_s27 = sld [smem:[#allocation13_spill]] }
 0x2ba   : > { %s1431_s28 = sld [smem:[#allocation14_spill]]  ;;  %s1432_s29 = sld [smem:[#allocation15_spill]] }
 0x2bb   : > { %s1433_s30 = sld [smem:[#allocation16_spill]]  ;;  %s1434_s18 = smov %s914_s19 }
 0x2bc   : > { %s1435_s19 = smov %s918_s20  ;;  %s1437_s21 = smov %s926_s22 }
 0x2bd   : > { %s1436_s20 = smov %s1427_s15  ;;  %s1438_s22 = smov %s930_s23 }
 0x2be   : > { %s1439_s23 = smov %s1428_s11  ;;  %s1440_s24 = smov %s938_s25 }
 0x2bf   : > { %s1441_s25 = smov %s942_s26  ;;  %s1442_s26 = smov %s1429_s13 }
 0x2c0   :  { %23 = sbr.rel (!%p1332_p6) target bundleno = 15 (0xf), region = 105 }
 0x2c7   :  { %470 = vsyncpa [#allocation4], 1 }
 0x2c8   :  { %472 = vsyncpa [#allocation4 + $0x1], 1 }
 0x2c9   :  { %473 = vsyncpa [#allocation7], 1 }
 0x2ca   :  { %475 = vsyncpa [#allocation7 + $0x1], 1 }
 0x2cb   :  { %476 = vsyncpa [#allocation5], 1 }
 0x2cc   :  { %478 = vsyncpa [#allocation5 + $0x1], 1 }

</bundles_post_ra>
